<compile_context>
chip_gen: v7x
topology: tpu7x:2x2x1
jax: 0.10.0
libtpu: 0.0.40
codegen_flags: <defaults>
</compile_context>

<pallas_src>
import math

import jax
import jax.numpy as jnp
from jax.experimental import pallas as pl
from jax.experimental.pallas import tpu as pltpu

HIDDEN = 512
LANE = 128


def _mlp_kernel(x_ref, w1_ref, b1_ref, w2_ref, b2_ref, w3_ref, b3_ref, o_ref):
    """Fused 3-layer MLP for one batch tile.

    Matmul operands are bf16 (native MXU dtype), accumulation and the
    bias-add / ReLU epilogue are f32."""
    x = x_ref[...]                                                    # bf16 (tile_b, n_x)
    h1 = jnp.dot(x, w1_ref[...], preferred_element_type=jnp.float32) + b1_ref[...]
    h1 = jnp.maximum(h1, 0.0)
    h2 = jnp.dot(h1.astype(jnp.bfloat16), w2_ref[...],
                 preferred_element_type=jnp.float32) + b2_ref[...]
    h2 = jnp.maximum(h2, 0.0)
    y = jnp.dot(h2.astype(jnp.bfloat16), w3_ref[...],
                preferred_element_type=jnp.float32) + b3_ref[...]
    o_ref[...] = y.astype(o_ref.dtype)


def mlp_forward(x, params, *, tile_b=None):
    """x: (B, n_x) float32. params: w1,b1,w2,b2,w3,b3 with weights already (in, out)."""
    B, n_x = x.shape
    n_y = params["w3"].shape[1]

    # Pad the fc3 output width to a lane-dense multiple of 128 (unmasked stores).
    n_y_pad = max(LANE, ((n_y + LANE - 1) // LANE) * LANE)

    # Batch tile: single grid step for small batches; MXU-sized 256-row tiles
    # otherwise (multiple "parallel" steps -> megacore sharding on v7x).
    if tile_b is None:
        tile_b = B if B <= 256 else 256
    assert B % tile_b == 0, "batch must be a multiple of tile_b"
    grid_b = B // tile_b

    # bf16 MXU operands; biases stay f32 for the VPU epilogue.
    x_bf = x.astype(jnp.bfloat16)
    w1 = params["w1"].astype(jnp.bfloat16)
    w2 = params["w2"].astype(jnp.bfloat16)
    w3 = jnp.zeros((HIDDEN, n_y_pad), jnp.bfloat16)
    w3 = w3.at[:, :n_y].set(params["w3"].astype(jnp.bfloat16))
    b1 = params["b1"].astype(jnp.float32)
    b2 = params["b2"].astype(jnp.float32)
    b3 = jnp.zeros((1, n_y_pad), jnp.float32).at[:, :n_y].set(params["b3"])

    # Grid-invariant residents: constant index map -> no re-DMA across steps.
    full = lambda shape: pl.BlockSpec(shape, lambda i: (0, 0))

    out_padded = pl.pallas_call(
        _mlp_kernel,
        out_shape=jax.ShapeDtypeStruct((B, n_y_pad), jnp.float32),
        grid_spec=pl.GridSpec(
            grid=(grid_b,),
            in_specs=[
                pl.BlockSpec((tile_b, n_x), lambda i: (i, 0)),   # x tile
                full((n_x, HIDDEN)),                             # w1
                full((1, HIDDEN)),                               # b1
                full((HIDDEN, HIDDEN)),                          # w2
                full((1, HIDDEN)),                               # b2
                full((HIDDEN, n_y_pad)),                         # w3 (lane-padded)
                full((1, n_y_pad)),                              # b3 (lane-padded)
            ],
            out_specs=pl.BlockSpec((tile_b, n_y_pad), lambda i: (i, 0)),
        ),
        compiler_params=pltpu.CompilerParams(
            dimension_semantics=("parallel",),
            vmem_limit_bytes=32 * 1024 * 1024,
        ),
    )(x_bf, w1, b1, w2, b2, w3, b3)

    # Slice the lane padding back off (free layout plumbing in XLA).
    return out_padded[:, :n_y]


def init_params(key, n_x, n_y):
    """torch.nn.Linear-style init (uniform +/- 1/sqrt(fan_in)), weights pre-transposed
    to (in_features, out_features)."""
    ks = jax.random.split(key, 6)

    def linear(kw, kb, fan_in, fan_out):
        bound = 1.0 / math.sqrt(fan_in)
        w = jax.random.uniform(kw, (fan_in, fan_out), jnp.float32, -bound, bound)
        b = jax.random.uniform(kb, (1, fan_out), jnp.float32, -bound, bound)
        return w, b

    w1, b1 = linear(ks[0], ks[1], n_x, HIDDEN)
    w2, b2 = linear(ks[2], ks[3], HIDDEN, HIDDEN)
    w3, b3 = linear(ks[4], ks[5], HIDDEN, n_y)
    return dict(w1=w1, b1=b1, w2=w2, b2=b2, w3=w3, b3=b3)


def mlp_reference_f32(x, p):
    h1 = jnp.maximum(x @ p["w1"] + p["b1"], 0.0)
    h2 = jnp.maximum(h1 @ p["w2"] + p["b2"], 0.0)
    return h2 @ p["w3"] + p["b3"]


def mlp_reference_bf16(x, p):
    """Reference matched to the kernel's numerics: bf16 operands, f32 accumulation."""
    def mm(a, w):
        return jnp.dot(a.astype(jnp.bfloat16), w.astype(jnp.bfloat16),
                       preferred_element_type=jnp.float32)
    h1 = jnp.maximum(mm(x, p["w1"]) + p["b1"], 0.0)
    h2 = jnp.maximum(mm(h1, p["w2"]) + p["b2"], 0.0)
    return mm(h2, p["w3"]) + p["b3"]


if __name__ == "__main__":
    # Small shapes consistent with the module: conf.n_x=32, conf.n_y=8, batch=16.
    B, n_x, n_y = 16, 32, 8

    key = jax.random.PRNGKey(0)
    k_x, k_p = jax.random.split(key)
    x = jax.random.normal(k_x, (B, n_x), jnp.float32)
    params = init_params(k_p, n_x, n_y)

    out = mlp_forward(x, params)          # demo shapes -> single grid step
    out = jax.block_until_ready(out)
    assert out.shape == (B, n_y)

    # Tight check against a numerically-matched (bf16 operand / f32 accum) reference.
    ref_bf16 = mlp_reference_bf16(x, params)
    assert jnp.allclose(out, ref_bf16, atol=2e-3, rtol=2e-3), "mismatch vs bf16 reference"

    # Loose sanity check against the full-f32 PyTorch-equivalent reference.
    ref_f32 = mlp_reference_f32(x, params)
    assert jnp.allclose(out, ref_f32, atol=5e-2, rtol=5e-2), "mismatch vs f32 reference"

    print("KERNEL_OK")
</pallas_src>

<mosaic_0001>
module attributes {stable_mosaic.version = 11 : i64} {
  func.func @_mlp_kernel(%arg0: i32, %arg1: memref<16x32xbf16, #tpu.memory_space<vmem>>, %arg2: memref<32x512xbf16, #tpu.memory_space<vmem>>, %arg3: memref<1x512xf32, #tpu.memory_space<vmem>>, %arg4: memref<512x512xbf16, #tpu.memory_space<vmem>>, %arg5: memref<1x512xf32, #tpu.memory_space<vmem>>, %arg6: memref<512x128xbf16, #tpu.memory_space<vmem>>, %arg7: memref<1x128xf32, #tpu.memory_space<vmem>>, %arg8: memref<16x128xf32, #tpu.memory_space<vmem>>) attributes {dimension_semantics = [#tpu.dimension_semantics<parallel>], iteration_bounds = array<i64: 1>, scalar_prefetch = 0 : i64, scratch_operands = 0 : i64, tpu.core_type = #tpu.core_type<tc>, window_params = [{transform_indices = @transform_0, window_bounds = array<i64: 16, 32>}, {pipeline_mode = #tpu.pipeline_mode<synchronous>, transform_indices = @transform_1, window_bounds = array<i64: 32, 512>}, {pipeline_mode = #tpu.pipeline_mode<synchronous>, transform_indices = @transform_2, window_bounds = array<i64: 1, 512>}, {pipeline_mode = #tpu.pipeline_mode<synchronous>, transform_indices = @transform_3, window_bounds = array<i64: 512, 512>}, {pipeline_mode = #tpu.pipeline_mode<synchronous>, transform_indices = @transform_4, window_bounds = array<i64: 1, 512>}, {pipeline_mode = #tpu.pipeline_mode<synchronous>, transform_indices = @transform_5, window_bounds = array<i64: 512, 128>}, {pipeline_mode = #tpu.pipeline_mode<synchronous>, transform_indices = @transform_6, window_bounds = array<i64: 1, 128>}, {transform_indices = @transform_7, window_bounds = array<i64: 16, 128>}]} {
    %c0 = arith.constant 0 : index
    %c0_0 = arith.constant 0 : index
    %0 = vector.load %arg1[%c0, %c0_0] : memref<16x32xbf16, #tpu.memory_space<vmem>>, vector<16x32xbf16>
    %c0_1 = arith.constant 0 : index
    %c0_2 = arith.constant 0 : index
    %1 = vector.load %arg2[%c0_1, %c0_2] : memref<32x512xbf16, #tpu.memory_space<vmem>>, vector<32x512xbf16>
    %cst = arith.constant dense<0.000000e+00> : vector<16x512xf32>
    %2 = tpu.matmul %0, %1, %cst {dimension_numbers = #tpu.dot_dimension_numbers<[1], [0], [0], [1], [0, 0, 1, 1], [], []>} : vector<16x32xbf16>, vector<32x512xbf16>, vector<16x512xf32> -> vector<16x512xf32>
    %c0_3 = arith.constant 0 : index
    %c0_4 = arith.constant 0 : index
    %3 = vector.load %arg3[%c0_3, %c0_4] : memref<1x512xf32, #tpu.memory_space<vmem>>, vector<1x512xf32>
    %4 = vector.broadcast %3 : vector<1x512xf32> to vector<16x512xf32>
    %5 = arith.addf %2, %4 : vector<16x512xf32>
    %cst_5 = arith.constant 0.000000e+00 : f32
    %6 = vector.broadcast %cst_5 : f32 to vector<16x512xf32>
    %7 = arith.maximumf %5, %6 : vector<16x512xf32>
    %8 = arith.truncf %7 : vector<16x512xf32> to vector<16x512xbf16>
    %c0_6 = arith.constant 0 : index
    %c0_7 = arith.constant 0 : index
    %9 = vector.load %arg4[%c0_6, %c0_7] : memref<512x512xbf16, #tpu.memory_space<vmem>>, vector<512x512xbf16>
    %cst_8 = arith.constant dense<0.000000e+00> : vector<16x512xf32>
    %10 = tpu.matmul %8, %9, %cst_8 {dimension_numbers = #tpu.dot_dimension_numbers<[1], [0], [0], [1], [0, 0, 1, 1], [], []>} : vector<16x512xbf16>, vector<512x512xbf16>, vector<16x512xf32> -> vector<16x512xf32>
    %c0_9 = arith.constant 0 : index
    %c0_10 = arith.constant 0 : index
    %11 = vector.load %arg5[%c0_9, %c0_10] : memref<1x512xf32, #tpu.memory_space<vmem>>, vector<1x512xf32>
    %12 = vector.broadcast %11 : vector<1x512xf32> to vector<16x512xf32>
    %13 = arith.addf %10, %12 : vector<16x512xf32>
    %cst_11 = arith.constant 0.000000e+00 : f32
    %14 = vector.broadcast %cst_11 : f32 to vector<16x512xf32>
    %15 = arith.maximumf %13, %14 : vector<16x512xf32>
    %16 = arith.truncf %15 : vector<16x512xf32> to vector<16x512xbf16>
    %c0_12 = arith.constant 0 : index
    %c0_13 = arith.constant 0 : index
    %17 = vector.load %arg6[%c0_12, %c0_13] : memref<512x128xbf16, #tpu.memory_space<vmem>>, vector<512x128xbf16>
    %cst_14 = arith.constant dense<0.000000e+00> : vector<16x128xf32>
    %18 = tpu.matmul %16, %17, %cst_14 {dimension_numbers = #tpu.dot_dimension_numbers<[1], [0], [0], [1], [0, 0, 1, 1], [], []>} : vector<16x512xbf16>, vector<512x128xbf16>, vector<16x128xf32> -> vector<16x128xf32>
    %c0_15 = arith.constant 0 : index
    %c0_16 = arith.constant 0 : index
    %19 = vector.load %arg7[%c0_15, %c0_16] : memref<1x128xf32, #tpu.memory_space<vmem>>, vector<1x128xf32>
    %20 = vector.broadcast %19 : vector<1x128xf32> to vector<16x128xf32>
    %21 = arith.addf %18, %20 : vector<16x128xf32>
    %c0_17 = arith.constant 0 : index
    %c0_18 = arith.constant 0 : index
    %22 = vector.load %arg8[%c0_17, %c0_18] : memref<16x128xf32, #tpu.memory_space<vmem>>, vector<16x128xf32>
    tpu.vector_store %arg8[%c0_17, %c0_18], %21 {strides = array<i32>} : memref<16x128xf32, #tpu.memory_space<vmem>>, vector<16x128xf32>,
    return
  }
  func.func @transform_0(%arg0: i32) -> (i32, i32) {
    %c0_i32 = arith.constant 0 : i32
    %c0_i32_0 = arith.constant 0 : i32
    return %arg0, %c0_i32 : i32, i32
  }
  func.func @transform_1(%arg0: i32) -> (i32, i32) {
    %c0_i32 = arith.constant 0 : i32
    %c0_i32_0 = arith.constant 0 : i32
    %c0_i32_1 = arith.constant 0 : i32
    return %c0_i32, %c0_i32_0 : i32, i32
  }
  func.func @transform_2(%arg0: i32) -> (i32, i32) {
    %c0_i32 = arith.constant 0 : i32
    %c0_i32_0 = arith.constant 0 : i32
    %c0_i32_1 = arith.constant 0 : i32
    return %c0_i32, %c0_i32_0 : i32, i32
  }
  func.func @transform_3(%arg0: i32) -> (i32, i32) {
    %c0_i32 = arith.constant 0 : i32
    %c0_i32_0 = arith.constant 0 : i32
    %c0_i32_1 = arith.constant 0 : i32
    return %c0_i32, %c0_i32_0 : i32, i32
  }
  func.func @transform_4(%arg0: i32) -> (i32, i32) {
    %c0_i32 = arith.constant 0 : i32
    %c0_i32_0 = arith.constant 0 : i32
    %c0_i32_1 = arith.constant 0 : i32
    return %c0_i32, %c0_i32_0 : i32, i32
  }
  func.func @transform_5(%arg0: i32) -> (i32, i32) {
    %c0_i32 = arith.constant 0 : i32
    %c0_i32_0 = arith.constant 0 : i32
    %c0_i32_1 = arith.constant 0 : i32
    return %c0_i32, %c0_i32_0 : i32, i32
  }
  func.func @transform_6(%arg0: i32) -> (i32, i32) {
    %c0_i32 = arith.constant 0 : i32
    %c0_i32_0 = arith.constant 0 : i32
    %c0_i32_1 = arith.constant 0 : i32
    return %c0_i32, %c0_i32_0 : i32, i32
  }
  func.func @transform_7(%arg0: i32) -> (i32, i32) {
    %c0_i32 = arith.constant 0 : i32
    %c0_i32_0 = arith.constant 0 : i32
    return %arg0, %c0_i32 : i32, i32
  }
}

</mosaic_0001>

<bundles_post_ra>
// kernel: tpu_custom_call.1
= control target key start
LH: loop header
LB: loop body
LE: loop exit
PB: predicated region body
PF: predicated region fallthrough
CT: control target
= control target key end

     0   :  { %12 = vsyncpa [#allocation3], 0  ;;  %s2369_s0 = inlined_call_operand.hbm [shape: bf16[16,32], index: 0, kind: input, shape index: {}]   ;;  %s2370_s1 = inlined_call_operand.hbm [shape: bf16[32,512], index: 1, kind: input, shape index: {}]   ;;  %s2371_s2 = inlined_call_operand.vmem [shape: f32[1,512], index: 2, kind: input, shape index: {}]   ;;  %s2372_s3 = inlined_call_operand.hbm [shape: bf16[512,512], index: 3, kind: input, shape index: {}]   ;;  %s2373_s4 = inlined_call_operand.vmem [shape: f32[1,512], index: 4, kind: input, shape index: {}]   ;;  %s2374_s5 = inlined_call_operand.hbm [shape: bf16[512,128], index: 5, kind: input, shape index: {}]   ;;  %s2375_s6 = inlined_call_operand.vmem [shape: f32[1,128], index: 6, kind: input, shape index: {}]   ;;  %s2376_s7 = inlined_call_operand.hbm [shape: f32[16,128], index: 7, kind: output, shape index: {}]  }
   0x1   :  { %13 = vsyncpa [#allocation6], 0 }
   0x2   :  { %14 = vsyncpa [#allocation9], 0 }
   0x3   :  { %15 = vsyncpa [#allocation4], 0  ;;  %s2201_s24 = smov [#allocation5]   ;;  %s2083_s28 = scalar_lea.hbm %s2370_s1, 1024 }
   0x4   :  { %s33_s25 = sshll.u32 %s2201_s24, 4  ;;  %p2084_p0 = scmp.ne.s32.totalorder %s2370_s1, %s2083_s28  ;;  %s34_s25 = int_to_ptr.vmem [resolvable:$true] %s33_s25 }
   0x5   :  { %p2087_p1 = scmp.lt.u32.totalorder %s2083_s28, %s2370_s1 }
   0x7   :  { %p2089_p2 = pnand %p2087_p1, %p2084_p0 }
   0x9   :  { %2092 = shalt.err (!%p2089_p2)
}
   0xa   :  { %s2093_s10 = scalar_lea.vmem %s34_s25, 1024  ;;  %p2098_p4 = scmp.lt.s32.totalorder %s34_s25, %s34_s25 }
   0xb   :  { %p2094_p3 = scmp.ne.s32.totalorder %s34_s25, %s2093_s10  ;;  %p2099_p5 = scmp.lt.s32.totalorder %s2093_s10, %s2093_s10 }
   0xd   :  { %p2100_p6 = por %p2099_p5, %p2098_p4 }
   0xf   :  { %p2101_p7 = pnand %p2100_p6, %p2094_p3 }
  0x11   :  { %2104 = shalt.err (!%p2101_p7)
}
  0x12   :  { %s2202_s11 = smov 256   ;;  %s2203_s12 = smov 16  }
  0x13   :  { %39 = dma.hbm_to_vmem [thread:$0]  %s2370_s1, 1024, %s34_s25, [#allocation6], %s2202_s11, %s2202_s11, %s2203_s12  }
  0x14   :  { %s2204_s15 = smov [#allocation2]   ;;  %s2105_s19 = scalar_lea.hbm %s2369_s0, 128 }
  0x15   :  { %s21_s16 = sshll.u32 %s2204_s15, 4  ;;  %p2106_p8 = scmp.ne.s32.totalorder %s2369_s0, %s2105_s19  ;;  %s22_s16 = int_to_ptr.vmem [resolvable:$true] %s21_s16 }
  0x16   :  { %p2109_p9 = scmp.lt.u32.totalorder %s2105_s19, %s2369_s0 }
  0x18   :  { %p2111_p10 = pnand %p2109_p9, %p2106_p8 }
  0x1a   :  { %2114 = shalt.err (!%p2111_p10)
}
  0x1b   :  { %s2115_s24 = scalar_lea.vmem %s22_s16, 128  ;;  %p2120_p12 = scmp.lt.s32.totalorder %s22_s16, %s22_s16 }
  0x1c   :  { %p2116_p11 = scmp.ne.s32.totalorder %s22_s16, %s2115_s24  ;;  %p2121_p13 = scmp.lt.s32.totalorder %s2115_s24, %s2115_s24 }
  0x1e   :  { %p2122_p0 = por %p2121_p13, %p2120_p12 }
  0x20   :  { %p2123_p1 = pnand %p2122_p0, %p2116_p11 }
  0x22   :  { %2126 = shalt.err (!%p2123_p1)
}
  0x23   :  { %s2205_s1 = smov 64   ;;  %s2206_s25 = smov 4  }
  0x24   :  { %27 = dma.hbm_to_vmem [thread:$0]  %s2369_s0, 128, %s22_s16, [#allocation3], %s2205_s1, %s2205_s1, %s2206_s25  }
  0x25   :  { %s2207_s28 = smov [#allocation7]   ;;  %s2208_s30 = smov [#allocation8]  }
  0x26   :  { %s47_s29 = sshll.u32 %s2207_s28, 4  ;;  %s61_s8 = sshll.u32 %s2208_s30, 4  ;;  %s48_s29 = int_to_ptr.vmem [resolvable:$true] %s47_s29  ;;  %s2283_s8 = int_to_ptr.vmem [resolvable:$true] %s61_s8 }
  0x27   :  { %s2127_s13 = scalar_lea.hbm %s2372_s3, 16384 }
  0x28   :  { %p2128_p2 = scmp.ne.s32.totalorder %s2372_s3, %s2127_s13  ;;  %p2131_p3 = scmp.lt.u32.totalorder %s2127_s13, %s2372_s3 }
  0x2a   :  { %p2133_p4 = pnand %p2131_p3, %p2128_p2 }
  0x2c   :  { %2136 = shalt.err (!%p2133_p4)
}
  0x2d   :  { %s2137_s0 = scalar_lea.vmem %s48_s29, 16384  ;;  %p2142_p6 = scmp.lt.s32.totalorder %s48_s29, %s48_s29 }
  0x2e   :  { %p2138_p5 = scmp.ne.s32.totalorder %s48_s29, %s2137_s0  ;;  %p2143_p7 = scmp.lt.s32.totalorder %s2137_s0, %s2137_s0 }
  0x30   :  { %p2144_p8 = por %p2143_p7, %p2142_p6 }
  0x32   :  { %p2145_p9 = pnand %p2144_p8, %p2138_p5 }
  0x34   :  { %2148 = shalt.err (!%p2145_p9)
}
  0x35   :  { %53 = dma.hbm_to_vmem [thread:$0]  %s2372_s3, 16384, %s48_s29, [#allocation6], %s2202_s11, %s2202_s11, %s2203_s12  }
  0x36   :  { %s2149_s22 = scalar_lea.hbm %s2374_s5, 4096 }
  0x37   :  { %p2150_p10 = scmp.ne.s32.totalorder %s2374_s5, %s2149_s22  ;;  %p2153_p11 = scmp.lt.u32.totalorder %s2149_s22, %s2374_s5 }
  0x39   :  { %p2155_p12 = pnand %p2153_p11, %p2150_p10 }
  0x3b   :  { %2158 = shalt.err (!%p2155_p12)
}
  0x3c   :  { %s2159_s28 = scalar_lea.vmem %s2283_s8, 4096  ;;  %p2164_p0 = scmp.lt.s32.totalorder %s2283_s8, %s2283_s8 }
  0x3d   :  { %p2160_p13 = scmp.ne.s32.totalorder %s2283_s8, %s2159_s28  ;;  %p2165_p1 = scmp.lt.s32.totalorder %s2159_s28, %s2159_s28 }
  0x3f   :  { %p2166_p2 = por %p2165_p1, %p2164_p0 }
  0x41   :  { %p2167_p3 = pnand %p2166_p2, %p2160_p13 }
  0x43   :  { %2170 = shalt.err (!%p2167_p3)
}
  0x44   :  { %67 = dma.hbm_to_vmem [thread:$0]  %s2374_s5, 4096, %s2283_s8, [#allocation9], %s2205_s1, %s2205_s1, %s2206_s25  }
  0x45   :  { %2193 = dma.done.wait [#allocation3], 128  }
  0x46   :  { %2194 = vsyncadd [#allocation3], 4294967168 }
  0x47   :  { %2195 = dma.done.wait [#allocation6], 17408  }
  0x48   :  { %2196 = vsyncadd [#allocation6], 4294949888 }
  0x49   :  { %2197 = dma.done.wait [#allocation9], 4096  }
  0x4a   :  { %2198 = vsyncadd [#allocation9], 4294963200  ;;  %v2209_v0 = vmov 0   ;;  %v1846_v1 = vld [vmem:[#allocation5 + $0x4] ss:$16 sps:$4 sm:$0xff]   ;;  %v1852_v5 = vld [vmem:[#allocation2] sm:$0xff]  }
  0x4b   :  { %196 = vmatprep.mubr.bf16.mxu0 %v2209_v0  ;;  %239 = vmatprep.mubr.bf16.mxu1 %v2209_v0  ;;  %v1848_v2 = vld [vmem:[#allocation5] ss:$16 sps:$4 sm:$0xff]   ;;  %v1849_v3 = vld [vmem:[#allocation5 + $0x24] ss:$16 sps:$4 sm:$0xff]   ;;  %v1853_v6 = vld [vmem:[#allocation5 + $0xc] ss:$16 sps:$4 sm:$0xff]  }
  0x4c   :  { %164 = vmatprep.subr.bf16.mxu0 %v1846_v1  ;;  %v1851_v4 = vld [vmem:[#allocation5 + $0x20] ss:$16 sps:$4 sm:$0xff]   ;;  %v1855_v7 = vld [vmem:[#allocation5 + $0x8] ss:$16 sps:$4 sm:$0xff]   ;;  %v1856_v8 = vld [vmem:[#allocation5 + $0x2c] ss:$16 sps:$4 sm:$0xff]   ;;  %207 = vmatprep.subr.bf16.mxu1 %v1853_v6 }
  0x4d   :  { %165 = vmatpush1.bf16.msra.mxu0 %v1848_v2  ;;  %v1858_v9 = vld [vmem:[#allocation5 + $0x28] ss:$16 sps:$4 sm:$0xff]   ;;  %vm160_vm0 = vcmask 261120   ;;  %208 = vmatpush1.bf16.msra.mxu1 %v1855_v7  ;;  %v1859_v10 = vld [vmem:[#allocation7] ss:$16 sps:$4 sm:$0xff]   ;;  %s2210_s29 = smov [#allocation10]  }
  0x4e   :  { %166 = vmatprep.subr.bf16.mxu0 %v1849_v3  ;;  %v1861_v11 = vld [vmem:[#allocation7 + $0x4] ss:$16 sps:$4 sm:$0xff]   ;;  %209 = vmatprep.subr.bf16.mxu1 %v1856_v8  ;;  %v1864_v12 = vld [vmem:[#allocation7 + $0xc] ss:$16 sps:$4 sm:$0xff]   ;;  %v1862_v14 = vld [vmem:[#allocation7 + $0x8] ss:$16 sps:$4 sm:$0xff]  }
  0x4f   :  { %v1867_v13 = vld [vmem:[#allocation7 + $0x24] ss:$16 sps:$4 sm:$0xff]   ;;  %v1865_v15 = vld [vmem:[#allocation7 + $0x20] ss:$16 sps:$4 sm:$0xff]   ;;  %v1870_v16 = vld [vmem:[#allocation7 + $0x2c] ss:$16 sps:$4 sm:$0xff]  }
  0x50   :  { %v1873_v17 = vld [vmem:[#allocation7 + $0x44] ss:$16 sps:$4 sm:$0xff]   ;;  %v1868_v18 = vld [vmem:[#allocation7 + $0x28] ss:$16 sps:$4 sm:$0xff]   ;;  %v1871_v19 = vld [vmem:[#allocation7 + $0x40] ss:$16 sps:$4 sm:$0xff]  }
  0x51   :  { %167 = vmatpush1.bf16.msra.mxu0 %v1851_v4  ;;  %210 = vmatpush1.bf16.msra.mxu1 %v1858_v9  ;;  %v1876_v20 = vld [vmem:[#allocation7 + $0x4c] ss:$16 sps:$4 sm:$0xff]   ;;  %v1879_v21 = vld [vmem:[#allocation7 + $0x64] ss:$16 sps:$4 sm:$0xff]   ;;  %v1874_v22 = vld [vmem:[#allocation7 + $0x48] ss:$16 sps:$4 sm:$0xff]  }
  0x52   :  { %1052 = vmatprep.subr.bf16.mxu0 %v1861_v11  ;;  %1138 = vmatprep.subr.bf16.mxu1 %v1864_v12  ;;  %v1877_v23 = vld [vmem:[#allocation7 + $0x60] ss:$16 sps:$4 sm:$0xff]   ;;  %v1882_v24 = vld [vmem:[#allocation7 + $0x6c] ss:$16 sps:$4 sm:$0xff]   ;;  %v1885_v25 = vld [vmem:[#allocation7 + $0x84] ss:$16 sps:$4 sm:$0xff]   ;;  %v95_v12 = vlaneseq }
  0x53   :  { %v1880_v26 = vld [vmem:[#allocation7 + $0x68] ss:$16 sps:$4 sm:$0xff]   ;;  %v1883_v27 = vld [vmem:[#allocation7 + $0x80] ss:$16 sps:$4 sm:$0xff]   ;;  %v1888_v28 = vld [vmem:[#allocation7 + $0x8c] ss:$16 sps:$4 sm:$0xff]  }
  0x54   :  { %1611 = vmatmul.mubr.msk.bf16.vlgmr.msra.gmra.mrb[0].mxu0 %vm160_vm0, %v1852_v5  ;;  %1612 = vmatmul.mubr.msk.bf16.vlgmr.msra.gmra.mrb[0].mxu1 %vm160_vm0, %v1852_v5  ;;  %v1891_v29 = vld [vmem:[#allocation7 + $0xa4] ss:$16 sps:$4 sm:$0xff]   ;;  %v1886_v30 = vld [vmem:[#allocation7 + $0x88] ss:$16 sps:$4 sm:$0xff]   ;;  %v1889_v31 = vld [vmem:[#allocation7 + $0xa0] ss:$16 sps:$4 sm:$0xff]  }
  0x55   :  { %1053 = vmatpush1.bf16.msra.mxu0 %v1859_v10  ;;  %1139 = vmatpush1.bf16.msra.mxu1 %v1862_v14  ;;  %v1894_v32 = vld [vmem:[#allocation7 + $0xac] ss:$16 sps:$4 sm:$0xff]   ;;  %v1897_v33 = vld [vmem:[#allocation7 + $0xc4] ss:$16 sps:$4 sm:$0xff]   ;;  %v1892_v34 = vld [vmem:[#allocation7 + $0xa8] ss:$16 sps:$4 sm:$0xff]  }
  0x56   :  { %1054 = vmatprep.subr.bf16.mxu0 %v1867_v13  ;;  %1140 = vmatprep.subr.bf16.mxu1 %v1870_v16  ;;  %v1895_v35 = vld [vmem:[#allocation7 + $0xc0] ss:$16 sps:$4 sm:$0xff]   ;;  %v1900_v36 = vld [vmem:[#allocation7 + $0xcc] ss:$16 sps:$4 sm:$0xff]   ;;  %v1903_v37 = vld [vmem:[#allocation7 + $0xe4] ss:$16 sps:$4 sm:$0xff]  }
  0x57   :  { %v1898_v38 = vld [vmem:[#allocation7 + $0xc8] ss:$16 sps:$4 sm:$0xff]   ;;  %v1901_v39 = vld [vmem:[#allocation7 + $0xe0] ss:$16 sps:$4 sm:$0xff]   ;;  %v1906_v40 = vld [vmem:[#allocation7 + $0xec] ss:$16 sps:$4 sm:$0xff]  }
  0x58   :  { %v1909_v41 = vld [vmem:[#allocation7 + $0x104] ss:$16 sps:$4 sm:$0xff]   ;;  %v1904_v42 = vld [vmem:[#allocation7 + $0xe8] ss:$16 sps:$4 sm:$0xff]   ;;  %v1907_v43 = vld [vmem:[#allocation7 + $0x100] ss:$16 sps:$4 sm:$0xff]  }
  0x59   :  { %1055 = vmatpush1.bf16.msra.mxu0 %v1865_v15  ;;  %1141 = vmatpush1.bf16.msra.mxu1 %v1868_v18  ;;  %v1912_v44 = vld [vmem:[#allocation7 + $0x10c] ss:$16 sps:$4 sm:$0xff]   ;;  %v1915_v45 = vld [vmem:[#allocation7 + $0x124] ss:$16 sps:$4 sm:$0xff]   ;;  %v1910_v46 = vld [vmem:[#allocation7 + $0x108] ss:$16 sps:$4 sm:$0xff]  }
  0x5a   :  { %1056 = vmatprep.subr.bf16.mxu0 %v1873_v17  ;;  %1142 = vmatprep.subr.bf16.mxu1 %v1876_v20  ;;  %v1913_v47 = vld [vmem:[#allocation7 + $0x120] ss:$16 sps:$4 sm:$0xff]   ;;  %v1918_v48 = vld [vmem:[#allocation7 + $0x12c] ss:$16 sps:$4 sm:$0xff]   ;;  %v1921_v49 = vld [vmem:[#allocation7 + $0x144] ss:$16 sps:$4 sm:$0xff]  }
  0x5b   :  { %v1916_v50 = vld [vmem:[#allocation7 + $0x128] ss:$16 sps:$4 sm:$0xff]   ;;  %v1919_v51 = vld [vmem:[#allocation7 + $0x140] ss:$16 sps:$4 sm:$0xff]   ;;  %v1924_v52 = vld [vmem:[#allocation7 + $0x14c] ss:$16 sps:$4 sm:$0xff]  }
  0x5c   :  { %v1927_v53 = vld [vmem:[#allocation7 + $0x164] ss:$16 sps:$4 sm:$0xff]   ;;  %v1922_v54 = vld [vmem:[#allocation7 + $0x148] ss:$16 sps:$4 sm:$0xff]   ;;  %v1925_v55 = vld [vmem:[#allocation7 + $0x160] ss:$16 sps:$4 sm:$0xff]  }
  0x5d   :  { %1057 = vmatpush1.bf16.msra.mxu0 %v1871_v19  ;;  %1143 = vmatpush1.bf16.msra.mxu1 %v1874_v22  ;;  %v1930_v56 = vld [vmem:[#allocation7 + $0x16c] ss:$16 sps:$4 sm:$0xff]   ;;  %v1933_v57 = vld [vmem:[#allocation7 + $0x184] ss:$16 sps:$4 sm:$0xff]   ;;  %v1928_v58 = vld [vmem:[#allocation7 + $0x168] ss:$16 sps:$4 sm:$0xff]  }
  0x5e   :  { %1058 = vmatprep.subr.bf16.mxu0 %v1879_v21  ;;  %1144 = vmatprep.subr.bf16.mxu1 %v1882_v24  ;;  %v1931_v59 = vld [vmem:[#allocation7 + $0x180] ss:$16 sps:$4 sm:$0xff]   ;;  %v1936_v60 = vld [vmem:[#allocation7 + $0x18c] ss:$16 sps:$4 sm:$0xff]   ;;  %v1939_v61 = vld [vmem:[#allocation7 + $0x1a4] ss:$16 sps:$4 sm:$0xff]  }
  0x5f   :  { %v1934_v62 = vld [vmem:[#allocation7 + $0x188] ss:$16 sps:$4 sm:$0xff]   ;;  %v1937_v63 = vld [vmem:[#allocation7 + $0x1a0] ss:$16 sps:$4 sm:$0xff]   ;;  %v1942_v0 = vld [vmem:[#allocation7 + $0x1ac] ss:$16 sps:$4 sm:$0xff]  }
  0x60   :  { %v1940_v1 = vld [vmem:[#allocation7 + $0x1a8] ss:$16 sps:$4 sm:$0xff]   ;;  %v1945_v2 = vld [vmem:[#allocation7 + $0x1c4] ss:$16 sps:$4 sm:$0xff]   ;;  %v1948_v3 = vld [vmem:[#allocation7 + $0x1cc] ss:$16 sps:$4 sm:$0xff]  }
  0x61   :  { %1059 = vmatpush1.bf16.msra.mxu0 %v1877_v23  ;;  %1145 = vmatpush1.bf16.msra.mxu1 %v1880_v26  ;;  %v1943_v4 = vld [vmem:[#allocation7 + $0x1c0] ss:$16 sps:$4 sm:$0xff]   ;;  %v1946_v5 = vld [vmem:[#allocation7 + $0x1c8] ss:$16 sps:$4 sm:$0xff]   ;;  %v1951_v6 = vld [vmem:[#allocation7 + $0x1e4] ss:$16 sps:$4 sm:$0xff]  }
  0x62   :  { %1060 = vmatprep.subr.bf16.mxu0 %v1885_v25  ;;  %1146 = vmatprep.subr.bf16.mxu1 %v1888_v28  ;;  %v1954_v7 = vld [vmem:[#allocation7 + $0x1ec] ss:$16 sps:$4 sm:$0xff]   ;;  %v1949_v8 = vld [vmem:[#allocation7 + $0x1e0] ss:$16 sps:$4 sm:$0xff]   ;;  %v1952_v9 = vld [vmem:[#allocation7 + $0x1e8] ss:$16 sps:$4 sm:$0xff]  }
  0x63   :  { %v1957_v10 = vld [vmem:[#allocation7 + $0x204] ss:$16 sps:$4 sm:$0xff]   ;;  %v1960_v11 = vld [vmem:[#allocation7 + $0x20c] ss:$16 sps:$4 sm:$0xff]   ;;  %v2322_v13 = vshrl.u32 %v95_v12, 7  ;;  %s1588_s30 = sshll.u32 %s2210_s29, 4  ;;  %s1589_s30 = int_to_ptr.vmem [resolvable:$true] %s1588_s30 }
  0x64   :  { %v93_v15 = vld [vmem:[%s2371_s2] sm:$0xf]  ;;  %p2176_p5 = scmp.lt.s32.totalorder %s1589_s30, %s1589_s30 }
  0x65   :  { %1061 = vmatpush1.bf16.msra.mxu0 %v1883_v27  ;;  %1147 = vmatpush1.bf16.msra.mxu1 %v1886_v30  ;;  %v97_v14 = vsub.s32 0, %v2322_v13  ;;  %v101_v16 = vsub.s32 1, %v2322_v13  ;;  %v105_v18 = vsub.s32 2, %v2322_v13  ;;  %v109_v20 = vsub.s32 3, %v2322_v13  ;;  %v1994_v12 = vld [vmem:[#allocation7 + $0x2c8] ss:$16 sps:$4 sm:$0xff]  }
  0x66   :  { %1062 = vmatprep.subr.bf16.mxu0 %v1891_v29  ;;  %1148 = vmatprep.subr.bf16.mxu1 %v1894_v32 }
  0x67   :  { %v98_v17 = vrot.slane %v93_v15, %v97_v14  ;;  %v102_v19 = vrot.slane %v93_v15, %v101_v16  ;;  %v106_v24 = vrot.slane %v93_v15, %v105_v18  ;;  %v110_v27 = vrot.slane %v93_v15, %v109_v20  ;;  %v1999_v15 = vld [vmem:[#allocation7 + $0x2e4] ss:$16 sps:$4 sm:$0xff]  }
  0x69   :  { %1063 = vmatpush1.bf16.msra.mxu0 %v1889_v31  ;;  %1149 = vmatpush1.bf16.msra.mxu1 %v1892_v34 }
  0x6a   :  { %1064 = vmatprep.subr.bf16.mxu0 %v1897_v33  ;;  %1150 = vmatprep.subr.bf16.mxu1 %v1900_v36 }
  0x6d   :  { %1065 = vmatpush1.bf16.msra.mxu0 %v1895_v35  ;;  %1151 = vmatpush1.bf16.msra.mxu1 %v1898_v38 }
  0x6e   :  { %1066 = vmatprep.subr.bf16.mxu0 %v1903_v37  ;;  %1152 = vmatprep.subr.bf16.mxu1 %v1906_v40 }
  0x71   :  { %1067 = vmatpush1.bf16.msra.mxu0 %v1901_v39  ;;  %1153 = vmatpush1.bf16.msra.mxu1 %v1904_v42 }
  0x72   :  { %1068 = vmatprep.subr.bf16.mxu0 %v1909_v41  ;;  %1154 = vmatprep.subr.bf16.mxu1 %v1912_v44 }
  0x75   :  { %1069 = vmatpush1.bf16.msra.mxu0 %v1907_v43  ;;  %1155 = vmatpush1.bf16.msra.mxu1 %v1910_v46  ;;  %v1958_v46 = vld [vmem:[#allocation7 + $0x208] ss:$16 sps:$4 sm:$0xff]  }
  0x76   :  { %1070 = vmatprep.subr.bf16.mxu0 %v1915_v45  ;;  %1156 = vmatprep.subr.bf16.mxu1 %v1918_v48  ;;  %v1955_v45 = vld [vmem:[#allocation7 + $0x200] ss:$16 sps:$4 sm:$0xff]  }
  0x79   :  { %1071 = vmatpush1.bf16.msra.mxu0 %v1913_v47  ;;  %1157 = vmatpush1.bf16.msra.mxu1 %v1916_v50  ;;  %v1966_v50 = vld [vmem:[#allocation7 + $0x22c] ss:$16 sps:$4 sm:$0xff]  }
  0x7a   :  { %1072 = vmatprep.subr.bf16.mxu0 %v1921_v49  ;;  %1158 = vmatprep.subr.bf16.mxu1 %v1924_v52  ;;  %v1963_v49 = vld [vmem:[#allocation7 + $0x224] ss:$16 sps:$4 sm:$0xff]  }
  0x7d   :  { %1073 = vmatpush1.bf16.msra.mxu0 %v1919_v51  ;;  %1159 = vmatpush1.bf16.msra.mxu1 %v1922_v54  ;;  %v1961_v54 = vld [vmem:[#allocation7 + $0x220] ss:$16 sps:$4 sm:$0xff]  }
  0x7e   :  { %1074 = vmatprep.subr.bf16.mxu0 %v1927_v53  ;;  %1160 = vmatprep.subr.bf16.mxu1 %v1930_v56 }
  0x81   :  { %1075 = vmatpush1.bf16.msra.mxu0 %v1925_v55  ;;  %1161 = vmatpush1.bf16.msra.mxu1 %v1928_v58  ;;  %v1964_v55 = vld [vmem:[#allocation7 + $0x228] ss:$16 sps:$4 sm:$0xff]   ;;  %v1972_v58 = vld [vmem:[#allocation7 + $0x24c] ss:$16 sps:$4 sm:$0xff]  }
  0x82   :  { %1076 = vmatprep.subr.bf16.mxu0 %v1933_v57  ;;  %1162 = vmatprep.subr.bf16.mxu1 %v1936_v60  ;;  %v1969_v57 = vld [vmem:[#allocation7 + $0x244] ss:$16 sps:$4 sm:$0xff]   ;;  %v1970_v60 = vld [vmem:[#allocation7 + $0x248] ss:$16 sps:$4 sm:$0xff]  }
  0x85   :  { %1077 = vmatpush1.bf16.msra.mxu0 %v1931_v59  ;;  %1163 = vmatpush1.bf16.msra.mxu1 %v1934_v62  ;;  %v1967_v59 = vld [vmem:[#allocation7 + $0x240] ss:$16 sps:$4 sm:$0xff]   ;;  %v1978_v62 = vld [vmem:[#allocation7 + $0x26c] ss:$16 sps:$4 sm:$0xff]  }
  0x86   :  { %1078 = vmatprep.subr.bf16.mxu0 %v1939_v61  ;;  %1164 = vmatprep.subr.bf16.mxu1 %v1942_v0  ;;  %v1975_v61 = vld [vmem:[#allocation7 + $0x264] ss:$16 sps:$4 sm:$0xff]   ;;  %v1976_v0 = vld [vmem:[#allocation7 + $0x268] ss:$16 sps:$4 sm:$0xff]  }
  0x89   :  { %1079 = vmatpush1.bf16.msra.mxu0 %v1937_v63  ;;  %1165 = vmatpush1.bf16.msra.mxu1 %v1940_v1  ;;  %v1973_v63 = vld [vmem:[#allocation7 + $0x260] ss:$16 sps:$4 sm:$0xff]   ;;  %v1981_v1 = vld [vmem:[#allocation7 + $0x284] ss:$16 sps:$4 sm:$0xff]  }
  0x8a   :  { %1080 = vmatprep.subr.bf16.mxu0 %v1945_v2  ;;  %1166 = vmatprep.subr.bf16.mxu1 %v1948_v3  ;;  %v1984_v2 = vld [vmem:[#allocation7 + $0x28c] ss:$16 sps:$4 sm:$0xff]   ;;  %v1979_v3 = vld [vmem:[#allocation7 + $0x280] ss:$16 sps:$4 sm:$0xff]  }
  0x8d   :  { %1081 = vmatpush1.bf16.msra.mxu0 %v1943_v4  ;;  %1167 = vmatpush1.bf16.msra.mxu1 %v1946_v5  ;;  %v1982_v4 = vld [vmem:[#allocation7 + $0x288] ss:$16 sps:$4 sm:$0xff]   ;;  %v1987_v5 = vld [vmem:[#allocation7 + $0x2a4] ss:$16 sps:$4 sm:$0xff]  }
  0x8e   :  { %1082 = vmatprep.subr.bf16.mxu0 %v1951_v6  ;;  %1168 = vmatprep.subr.bf16.mxu1 %v1954_v7  ;;  %v1990_v6 = vld [vmem:[#allocation7 + $0x2ac] ss:$16 sps:$4 sm:$0xff]   ;;  %v1985_v7 = vld [vmem:[#allocation7 + $0x2a0] ss:$16 sps:$4 sm:$0xff]  }
  0x91   :  { %1083 = vmatpush1.bf16.msra.mxu0 %v1949_v8  ;;  %1169 = vmatpush1.bf16.msra.mxu1 %v1952_v9  ;;  %v1988_v8 = vld [vmem:[#allocation7 + $0x2a8] ss:$16 sps:$4 sm:$0xff]   ;;  %v1993_v9 = vld [vmem:[#allocation7 + $0x2c4] ss:$16 sps:$4 sm:$0xff]  }
  0x92   :  { %1095 = vmatprep.subr.bf16.mxu0 %v1957_v10  ;;  %1181 = vmatprep.subr.bf16.mxu1 %v1960_v11  ;;  %v1996_v10 = vld [vmem:[#allocation7 + $0x2cc] ss:$16 sps:$4 sm:$0xff]   ;;  %v1991_v11 = vld [vmem:[#allocation7 + $0x2c0] ss:$16 sps:$4 sm:$0xff]  }
 0x127   :  { %v198_v21 = vpop.f32.mrb[0].mxu0  ;;  %v241_v31 = vpop.f32.mrb[0].mxu1 }
 0x128   :  { %v199_v22 = vadd.f32 %v198_v21, %v98_v17  ;;  %v200_v23 = vpop.f32.mrb[1].mxu0  ;;  %v242_v34 = vadd.f32 %v241_v31, %v106_v24  ;;  %v243_v35 = vpop.f32.mrb[1].mxu1  ;;  %v2000_v21 = vld [vmem:[#allocation7 + $0x2e8] ss:$16 sps:$4 sm:$0xff]   ;;  %v2020_v31 = vld [vmem:[#allocation7 + $0x34c] ss:$16 sps:$4 sm:$0xff]  }
 0x129   :  { %v201_v25 = vadd.f32 %v200_v23, %v102_v19  ;;  %v202_v26 = vpop.f32.mrb[2].mxu0  ;;  %v244_v38 = vadd.f32 %v243_v35, %v110_v27  ;;  %v245_v39 = vpop.f32.mrb[2].mxu1  ;;  %v2008_v23 = vld [vmem:[#allocation7 + $0x30c] ss:$16 sps:$4 sm:$0xff]  }
 0x12a   :  { %v203_v28 = vadd.f32 %v202_v26, %v98_v17  ;;  %v204_v29 = vpop.f32.mrb[3].mxu0  ;;  %v250_v32 = vmax.f32 %v199_v22, 0.0  ;;  %v252_v41 = vmax.f32 %v242_v34, 0.0  ;;  %v246_v42 = vadd.f32 %v245_v39, %v106_v24  ;;  %v247_v43 = vpop.f32.mrb[3].mxu1  ;;  %v2002_v17 = vld [vmem:[#allocation7 + $0x2ec] ss:$16 sps:$4 sm:$0xff]  }
 0x12b   :  { %v205_v30 = vadd.f32 %v204_v29, %v102_v19  ;;  %v251_v36 = vmax.f32 %v201_v25, 0.0  ;;  %v253_v47 = vmax.f32 %v244_v38, 0.0  ;;  %v248_v48 = vadd.f32 %v247_v43, %v110_v27  ;;  %v1997_v19 = vld [vmem:[#allocation7 + $0x2e0] ss:$16 sps:$4 sm:$0xff]   ;;  %v2005_v22 = vld [vmem:[#allocation7 + $0x304] ss:$16 sps:$4 sm:$0xff]  }
 0x12c   :  { %v254_v33 = vmax.f32 %v203_v28, 0.0  ;;  %v256_v51 = vmax.f32 %v246_v42, 0.0  ;;  %v2003_v24 = vld [vmem:[#allocation7 + $0x300] ss:$16 sps:$4 sm:$0xff]   ;;  %v2006_v25 = vld [vmem:[#allocation7 + $0x308] ss:$16 sps:$4 sm:$0xff]  }
 0x12d   :  { %v255_v37 = vmax.f32 %v205_v30, 0.0  ;;  %v257_v52 = vmax.f32 %v248_v48, 0.0  ;;  %v2011_v26 = vld [vmem:[#allocation7 + $0x324] ss:$16 sps:$4 sm:$0xff]   ;;  %v2014_v27 = vld [vmem:[#allocation7 + $0x32c] ss:$16 sps:$4 sm:$0xff]  }
 0x12e   :  { %v258_v40 = vpack.c.bf16 %v254_v33, %v250_v32  ;;  %v2339_v53 = vpack.c.bf16 %v256_v51, %v252_v41  ;;  %v2009_v28 = vld [vmem:[#allocation7 + $0x320] ss:$16 sps:$4 sm:$0xff]   ;;  %v2012_v29 = vld [vmem:[#allocation7 + $0x328] ss:$16 sps:$4 sm:$0xff]   ;;  %v2017_v30 = vld [vmem:[#allocation7 + $0x344] ss:$16 sps:$4 sm:$0xff]  }
 0x12f   :  { %v259_v44 = vpack.c.bf16 %v255_v37, %v251_v36  ;;  %v261_v56 = vpack.c.bf16 %v257_v52, %v253_v47  ;;  %v2015_v32 = vld [vmem:[#allocation7 + $0x340] ss:$16 sps:$4 sm:$0xff]   ;;  %v2018_v33 = vld [vmem:[#allocation7 + $0x348] ss:$16 sps:$4 sm:$0xff]   ;;  %v2023_v34 = vld [vmem:[#allocation7 + $0x364] ss:$16 sps:$4 sm:$0xff]  }
 0x130   :  { %v2026_v35 = vld [vmem:[#allocation7 + $0x36c] ss:$16 sps:$4 sm:$0xff]   ;;  %v2021_v36 = vld [vmem:[#allocation7 + $0x360] ss:$16 sps:$4 sm:$0xff]   ;;  %v2024_v37 = vld [vmem:[#allocation7 + $0x368] ss:$16 sps:$4 sm:$0xff]  }
 0x131   :  { %1084 = vmatprep.mubr.bf16.mxu0 %v259_v44  ;;  %1170 = vmatprep.mubr.bf16.mxu1 %v259_v44  ;;  %v2029_v38 = vld [vmem:[#allocation7 + $0x384] ss:$16 sps:$4 sm:$0xff]   ;;  %v2032_v39 = vld [vmem:[#allocation7 + $0x38c] ss:$16 sps:$4 sm:$0xff]   ;;  %v2030_v41 = vld [vmem:[#allocation7 + $0x388] ss:$16 sps:$4 sm:$0xff]  }
 0x132   :  { %1085 = vmatmul.mubr.bf16.vlgmr.msra.gmra.mrb[4].mxu0 %v258_v40  ;;  %1171 = vmatmul.mubr.bf16.vlgmr.msra.gmra.mrb[4].mxu1 %v258_v40  ;;  %v2027_v40 = vld [vmem:[#allocation7 + $0x380] ss:$16 sps:$4 sm:$0xff]   ;;  %v2035_v42 = vld [vmem:[#allocation7 + $0x3a4] ss:$16 sps:$4 sm:$0xff]   ;;  %v2038_v43 = vld [vmem:[#allocation7 + $0x3ac] ss:$16 sps:$4 sm:$0xff]  }
 0x133   :  { %1096 = vmatpush1.bf16.msra.mxu0 %v1955_v45  ;;  %1182 = vmatpush1.bf16.msra.mxu1 %v1958_v46  ;;  %v2033_v44 = vld [vmem:[#allocation7 + $0x3a0] ss:$16 sps:$4 sm:$0xff]   ;;  %v2036_v45 = vld [vmem:[#allocation7 + $0x3a8] ss:$16 sps:$4 sm:$0xff]   ;;  %v2041_v46 = vld [vmem:[#allocation7 + $0x3c4] ss:$16 sps:$4 sm:$0xff]  }
 0x134   :  { %1097 = vmatprep.subr.bf16.mxu0 %v1963_v49  ;;  %1183 = vmatprep.subr.bf16.mxu1 %v1966_v50  ;;  %v2044_v47 = vld [vmem:[#allocation7 + $0x3cc] ss:$16 sps:$4 sm:$0xff]   ;;  %v2039_v48 = vld [vmem:[#allocation7 + $0x3c0] ss:$16 sps:$4 sm:$0xff]   ;;  %v2042_v49 = vld [vmem:[#allocation7 + $0x3c8] ss:$16 sps:$4 sm:$0xff]  }
 0x135   :  { %1127 = vmatprep.mubr.bf16.mxu0 %v261_v56  ;;  %1213 = vmatprep.mubr.bf16.mxu1 %v261_v56  ;;  %v2047_v50 = vld [vmem:[#allocation7 + $0x3e4] ss:$16 sps:$4 sm:$0xff]   ;;  %v2050_v51 = vld [vmem:[#allocation7 + $0x3ec] ss:$16 sps:$4 sm:$0xff]   ;;  %v2045_v52 = vld [vmem:[#allocation7 + $0x3e0] ss:$16 sps:$4 sm:$0xff]  }
 0x136   :  { %v2052_v56 = vld [vmem:[#allocation8 + $0xc0] sm:$0xff]  }
 0x137   :  { %1098 = vmatpush1.bf16.msra.mxu0 %v1961_v54  ;;  %1184 = vmatpush1.bf16.msra.mxu1 %v1964_v55  ;;  %v2048_v54 = vld [vmem:[#allocation7 + $0x3e8] ss:$16 sps:$4 sm:$0xff]   ;;  %v2051_v55 = vld [vmem:[#allocation8 + $0x40] sm:$0xff]  }
 0x138   :  { %1099 = vmatprep.subr.bf16.mxu0 %v1969_v57  ;;  %1185 = vmatprep.subr.bf16.mxu1 %v1972_v58  ;;  %v2053_v57 = vld [vmem:[#allocation8] sm:$0xff]  }
 0x139   :  { %v2054_v58 = vld [vmem:[#allocation8 + $0x80] sm:$0xff]  }
 0x13b   :  { %1100 = vmatpush1.bf16.msra.mxu0 %v1967_v59  ;;  %1186 = vmatpush1.bf16.msra.mxu1 %v1970_v60  ;;  %v2055_v59 = vld [vmem:[#allocation8 + $0x48] sm:$0xff]  }
 0x13c   :  { %1101 = vmatprep.subr.bf16.mxu0 %v1975_v61  ;;  %1187 = vmatprep.subr.bf16.mxu1 %v1978_v62  ;;  %v2056_v60 = vld [vmem:[#allocation8 + $0xc8] sm:$0xff]  }
 0x13d   :  { %v2057_v61 = vld [vmem:[#allocation8 + $0x8] sm:$0xff]  }
 0x13e   :  { %v2058_v62 = vld [vmem:[#allocation8 + $0x88] sm:$0xff]  }
 0x13f   :  { %1102 = vmatpush1.bf16.msra.mxu0 %v1973_v63  ;;  %1188 = vmatpush1.bf16.msra.mxu1 %v1976_v0  ;;  %v2059_v63 = vld [vmem:[#allocation8 + $0x50] sm:$0xff]  }
 0x140   :  { %1103 = vmatprep.subr.bf16.mxu0 %v1981_v1  ;;  %1189 = vmatprep.subr.bf16.mxu1 %v1984_v2  ;;  %v2060_v0 = vld [vmem:[#allocation8 + $0xd0] sm:$0xff]  }
 0x141   :  { %v2061_v1 = vld [vmem:[#allocation8 + $0x10] sm:$0xff]  }
 0x142   :  { %v2062_v2 = vld [vmem:[#allocation8 + $0x90] sm:$0xff]  }
 0x143   :  { %1104 = vmatpush1.bf16.msra.mxu0 %v1979_v3  ;;  %1190 = vmatpush1.bf16.msra.mxu1 %v1982_v4  ;;  %v2063_v3 = vld [vmem:[#allocation8 + $0x58] sm:$0xff]  }
 0x144   :  { %1105 = vmatprep.subr.bf16.mxu0 %v1987_v5  ;;  %1191 = vmatprep.subr.bf16.mxu1 %v1990_v6  ;;  %v2064_v4 = vld [vmem:[#allocation8 + $0xd8] sm:$0xff]   ;;  %v2067_v6 = vld [vmem:[#allocation8 + $0x60] sm:$0xff]  }
 0x145   :  { %v2065_v5 = vld [vmem:[#allocation8 + $0x18] sm:$0xff]  }
 0x147   :  { %1106 = vmatpush1.bf16.msra.mxu0 %v1985_v7  ;;  %1192 = vmatpush1.bf16.msra.mxu1 %v1988_v8  ;;  %v2068_v7 = vld [vmem:[#allocation8 + $0xe0] sm:$0xff]  }
 0x148   :  { %1107 = vmatprep.subr.bf16.mxu0 %v1993_v9  ;;  %1193 = vmatprep.subr.bf16.mxu1 %v1996_v10  ;;  %v2069_v8 = vld [vmem:[#allocation8 + $0x20] sm:$0xff]   ;;  %v2071_v10 = vld [vmem:[#allocation8 + $0x68] sm:$0xff]  }
 0x149   :  { %v2070_v9 = vld [vmem:[#allocation8 + $0xa0] sm:$0xff]  }
 0x14b   :  { %1108 = vmatpush1.bf16.msra.mxu0 %v1991_v11  ;;  %1194 = vmatpush1.bf16.msra.mxu1 %v1994_v12  ;;  %v2072_v11 = vld [vmem:[#allocation8 + $0xe8] sm:$0xff]  }
 0x14c   :  { %1109 = vmatprep.subr.bf16.mxu0 %v1999_v15  ;;  %1195 = vmatprep.subr.bf16.mxu1 %v2002_v17  ;;  %v2073_v12 = vld [vmem:[#allocation8 + $0x28] sm:$0xff]   ;;  %v2075_v17 = vld [vmem:[#allocation8 + $0x70] sm:$0xff]  }
 0x14d   :  { %v2074_v15 = vld [vmem:[#allocation8 + $0xa8] sm:$0xff]  }
 0x14f   :  { %1110 = vmatpush1.bf16.msra.mxu0 %v1997_v19  ;;  %1196 = vmatpush1.bf16.msra.mxu1 %v2000_v21  ;;  %v2076_v19 = vld [vmem:[#allocation8 + $0xf0] sm:$0xff]  }
 0x150   :  { %1111 = vmatprep.subr.bf16.mxu0 %v2005_v22  ;;  %1197 = vmatprep.subr.bf16.mxu1 %v2008_v23  ;;  %v2077_v21 = vld [vmem:[#allocation8 + $0x30] sm:$0xff]   ;;  %v2079_v23 = vld [vmem:[#allocation8 + $0x78] sm:$0xff]  }
 0x151   :  { %v2078_v22 = vld [vmem:[#allocation8 + $0xb0] sm:$0xff]  }
 0x153   :  { %1112 = vmatpush1.bf16.msra.mxu0 %v2003_v24  ;;  %1198 = vmatpush1.bf16.msra.mxu1 %v2006_v25  ;;  %v2080_v24 = vld [vmem:[#allocation8 + $0xf8] sm:$0xff]  }
 0x154   :  { %1113 = vmatprep.subr.bf16.mxu0 %v2011_v26  ;;  %1199 = vmatprep.subr.bf16.mxu1 %v2014_v27  ;;  %v2081_v25 = vld [vmem:[#allocation8 + $0x38] sm:$0xff]  }
 0x155   :  { %v2082_v26 = vld [vmem:[#allocation8 + $0xb8] sm:$0xff]  }
 0x156   :  { %v390_v27 = vld [vmem:[%s2373_s4] sm:$0xf] }
 0x157   :  { %1114 = vmatpush1.bf16.msra.mxu0 %v2009_v28  ;;  %1200 = vmatpush1.bf16.msra.mxu1 %v2012_v29  ;;  %v395_v28 = vrot.slane %v390_v27, %v97_v14  ;;  %v403_v29 = vrot.slane %v390_v27, %v105_v18 }
 0x158   :  { %1115 = vmatprep.subr.bf16.mxu0 %v2017_v30  ;;  %1201 = vmatprep.subr.bf16.mxu1 %v2020_v31  ;;  %v399_v30 = vrot.slane %v390_v27, %v101_v16  ;;  %v407_v31 = vrot.slane %v390_v27, %v109_v20 }
 0x15b   :  { %1116 = vmatpush1.bf16.msra.mxu0 %v2015_v32  ;;  %1202 = vmatpush1.bf16.msra.mxu1 %v2018_v33 }
 0x15c   :  { %1117 = vmatprep.subr.bf16.mxu0 %v2023_v34  ;;  %1203 = vmatprep.subr.bf16.mxu1 %v2026_v35 }
 0x15f   :  { %1118 = vmatpush1.bf16.msra.mxu0 %v2021_v36  ;;  %1204 = vmatpush1.bf16.msra.mxu1 %v2024_v37 }
 0x160   :  { %1119 = vmatprep.subr.bf16.mxu0 %v2029_v38  ;;  %1205 = vmatprep.subr.bf16.mxu1 %v2032_v39 }
 0x163   :  { %1120 = vmatpush1.bf16.msra.mxu0 %v2027_v40  ;;  %1206 = vmatpush1.bf16.msra.mxu1 %v2030_v41 }
 0x164   :  { %1121 = vmatprep.subr.bf16.mxu0 %v2035_v42  ;;  %1207 = vmatprep.subr.bf16.mxu1 %v2038_v43 }
 0x167   :  { %1122 = vmatpush1.bf16.msra.mxu0 %v2033_v44  ;;  %1208 = vmatpush1.bf16.msra.mxu1 %v2036_v45 }
 0x168   :  { %1123 = vmatprep.subr.bf16.mxu0 %v2041_v46  ;;  %1209 = vmatprep.subr.bf16.mxu1 %v2044_v47 }
 0x16b   :  { %1124 = vmatpush1.bf16.msra.mxu0 %v2039_v48  ;;  %1210 = vmatpush1.bf16.msra.mxu1 %v2042_v49 }
 0x16c   :  { %1125 = vmatprep.subr.bf16.mxu0 %v2047_v50  ;;  %1211 = vmatprep.subr.bf16.mxu1 %v2050_v51 }
 0x16f   :  { %1126 = vmatpush1.bf16.msra.mxu0 %v2045_v52  ;;  %1212 = vmatpush1.bf16.msra.mxu1 %v2048_v54 }
 0x170   :  { %1774 = vmatprep.subr.bf16.mxu0 %v2051_v55  ;;  %1796 = vmatprep.subr.bf16.mxu1 %v2052_v56 }
 0x172   :  { %1128 = vmatmul.mubr.bf16.vlgmr.msra.gmra.mrb[4].mxu0 %v2339_v53  ;;  %1214 = vmatmul.mubr.bf16.vlgmr.msra.gmra.mrb[4].mxu1 %v2339_v53  ;;  %v2066_v53 = vld [vmem:[#allocation8 + $0x98] sm:$0xff]  }
 0x173   :  { %1775 = vmatpush3.bf16.msra.mxu0 %v2053_v57  ;;  %1797 = vmatpush3.bf16.msra.mxu1 %v2054_v58  ;;  %v1741_v58 = vld [vmem:[%s2375_s6] ss:$0 sm:$0xff]  ;;  %s2171_s6 = scalar_lea.vmem %s1589_s30, 256 }
 0x174   :  { %1776 = vmatprep.subr.bf16.mxu0 %v2055_v59  ;;  %1798 = vmatprep.subr.bf16.mxu1 %v2056_v60  ;;  %p2172_p4 = scmp.ne.s32.totalorder %s1589_s30, %s2171_s6  ;;  %p2177_p6 = scmp.lt.s32.totalorder %s2171_s6, %s2171_s6 }
 0x176   :  { %p2178_p7 = por %p2177_p6, %p2176_p5 }
 0x177   :  { %1777 = vmatpush3.bf16.msra.mxu0 %v2057_v61  ;;  %1799 = vmatpush3.bf16.msra.mxu1 %v2058_v62 }
 0x178   :  { %1778 = vmatprep.subr.bf16.mxu0 %v2059_v63  ;;  %1800 = vmatprep.subr.bf16.mxu1 %v2060_v0  ;;  %p2179_p8 = pnand %p2178_p7, %p2172_p4 }
 0x17b   :  { %1779 = vmatpush3.bf16.msra.mxu0 %v2061_v1  ;;  %1801 = vmatpush3.bf16.msra.mxu1 %v2062_v2 }
 0x17c   :  { %1780 = vmatprep.subr.bf16.mxu0 %v2063_v3  ;;  %1802 = vmatprep.subr.bf16.mxu1 %v2064_v4 }
 0x17f   :  { %1781 = vmatpush3.bf16.msra.mxu0 %v2065_v5  ;;  %1803 = vmatpush3.bf16.msra.mxu1 %v2066_v53 }
 0x180   :  { %1782 = vmatprep.subr.bf16.mxu0 %v2067_v6  ;;  %1804 = vmatprep.subr.bf16.mxu1 %v2068_v7 }
 0x183   :  { %1783 = vmatpush3.bf16.msra.mxu0 %v2069_v8  ;;  %1805 = vmatpush3.bf16.msra.mxu1 %v2070_v9 }
 0x184   :  { %1784 = vmatprep.subr.bf16.mxu0 %v2071_v10  ;;  %1806 = vmatprep.subr.bf16.mxu1 %v2072_v11 }
 0x187   :  { %1785 = vmatpush3.bf16.msra.mxu0 %v2073_v12  ;;  %1807 = vmatpush3.bf16.msra.mxu1 %v2074_v15 }
 0x188   :  { %1786 = vmatprep.subr.bf16.mxu0 %v2075_v17  ;;  %1808 = vmatprep.subr.bf16.mxu1 %v2076_v19 }
 0x18b   :  { %1787 = vmatpush3.bf16.msra.mxu0 %v2077_v21  ;;  %1809 = vmatpush3.bf16.msra.mxu1 %v2078_v22 }
 0x18c   :  { %1788 = vmatprep.subr.bf16.mxu0 %v2079_v23  ;;  %1810 = vmatprep.subr.bf16.mxu1 %v2080_v24 }
 0x18f   :  { %1789 = vmatpush3.bf16.msra.mxu0 %v2081_v25  ;;  %1811 = vmatpush3.bf16.msra.mxu1 %v2082_v26 }
 0x245   :  { %v1129_v32 = vpop.f32.mrb[4].mxu0  ;;  %v1215_v33 = vpop.f32.mrb[4].mxu1 }
 0x246   :  { %v1818_v34 = vadd.f32 %v1129_v32, %v395_v28  ;;  %v1822_v35 = vadd.f32 %v1215_v33, %v403_v29  ;;  %v1131_v36 = vpop.f32.mrb[5].mxu0  ;;  %v1217_v37 = vpop.f32.mrb[5].mxu1 }
 0x247   :  { %v1819_v38 = vadd.f32 %v1131_v36, %v399_v30  ;;  %v1823_v39 = vadd.f32 %v1217_v37, %v407_v31  ;;  %v1133_v40 = vpop.f32.mrb[6].mxu0  ;;  %v1219_v41 = vpop.f32.mrb[6].mxu1 }
 0x248   :  { %v1820_v14 = vadd.f32 %v1133_v40, %v395_v28  ;;  %v1824_v42 = vadd.f32 %v1219_v41, %v403_v29  ;;  %v1135_v43 = vpop.f32.mrb[7].mxu0  ;;  %v1221_v18 = vpop.f32.mrb[7].mxu1  ;;  %v1224_v16 = vmax.f32 %v1818_v34, 0.0  ;;  %v1226_v46 = vmax.f32 %v1822_v35, 0.0 }
 0x249   :  { %v1821_v44 = vadd.f32 %v1135_v43, %v399_v30  ;;  %v1825_v45 = vadd.f32 %v1221_v18, %v407_v31  ;;  %v1225_v47 = vmax.f32 %v1819_v38, 0.0  ;;  %v1227_v48 = vmax.f32 %v1823_v39, 0.0 }
 0x24a   :  { %v1228_v13 = vmax.f32 %v1820_v14, 0.0  ;;  %v1230_v20 = vmax.f32 %v1824_v42, 0.0 }
 0x24b   :  { %v1229_v49 = vmax.f32 %v1821_v44, 0.0  ;;  %v1231_v50 = vmax.f32 %v1825_v45, 0.0 }
 0x24c   :  { %v1232_v51 = vpack.c.bf16 %v1228_v13, %v1224_v16  ;;  %v1234_v52 = vpack.c.bf16 %v1230_v20, %v1226_v46 }
 0x24d   :  { %v1233_v54 = vpack.c.bf16 %v1229_v49, %v1225_v47  ;;  %v1235_v55 = vpack.c.bf16 %v1231_v50, %v1227_v48 }
 0x24f   :  { %1531 = vmatprep.mubr.bf16.mxu0 %v1233_v54  ;;  %1572 = vmatprep.mubr.bf16.mxu1 %v1235_v55 }
 0x250   :  { %1532 = vmatmul.mubr.bf16.vlgmr.msra.gmra.mrb[8].mxu0 %v1232_v51  ;;  %1573 = vmatmul.mubr.bf16.vlgmr.msra.gmra.mrb[8].mxu1 %v1234_v52 }
 0x323   :  { %v1790_v56 = vpop.f32.mrb[8].mxu0  ;;  %v1812_v57 = vpop.f32.mrb[8].mxu1 }
 0x324   :  { %v1791_v59 = vpop.f32.mrb[9].mxu0  ;;  %v1813_v60 = vpop.f32.mrb[9].mxu1 }
 0x325   :  { %v1792_v61 = vadd.f32 %v1791_v59, %v1790_v56  ;;  %v1814_v62 = vadd.f32 %v1813_v60, %v1812_v57  ;;  %v1793_v63 = vpop.f32.mrb[10].mxu0  ;;  %v1815_v0 = vpop.f32.mrb[10].mxu1 }
 0x326   :  { %v1794_v1 = vpop.f32.mrb[11].mxu0  ;;  %v1816_v2 = vpop.f32.mrb[11].mxu1 }
 0x327   :  { %v1534_v3 = vadd.f32 %v1792_v61, %v1741_v58  ;;  %v1795_v4 = vadd.f32 %v1794_v1, %v1793_v63  ;;  %v1817_v5 = vadd.f32 %v1816_v2, %v1815_v0 }
 0x329   :  { %v1575_v53 = vadd.f32 %v1814_v62, %v1534_v3  ;;  %v1537_v6 = vadd.f32 %v1795_v4, %v1741_v58 }
 0x32b   :  { %1581 = vst [vmem:[#allocation10] sm:$0xff] %v1575_v53  ;;  %v1578_v7 = vadd.f32 %v1817_v5, %v1537_v6 }
 0x32d   :  { %1582 = vst [vmem:[#allocation10 + $0x8] sm:$0xff] %v1578_v7 }
 0x32e   :  { %2182 = shalt.err (!%p2179_p8)
}
 0x32f   :  { %s2183_s10 = scalar_lea.hbm %s2376_s7, 256 }
 0x330   :  { %p2184_p9 = scmp.ne.s32.totalorder %s2376_s7, %s2183_s10  ;;  %p2187_p10 = scmp.lt.u32.totalorder %s2183_s10, %s2376_s7 }
 0x332   :  { %p2189_p11 = pnand %p2187_p10, %p2184_p9 }
 0x334   :  { %2192 = shalt.err (!%p2189_p11)
}
 0x335   :  { %s2211_s18 = smov 128   ;;  %s2212_s0 = smov 8  }
 0x336   :  { %1594 = dma.vmem_to_hbm [thread:$0]  %s1589_s30, 256, %s2376_s7, [#allocation4], %s2211_s18, %s2211_s18, %s2212_s0  }
 0x337   :  { %2199 = dma.done.wait [#allocation4], 256  }
 0x338   :  { %2200 = vsyncadd [#allocation4], 4294967040 }
 0x339   :  { %1598 = vsyncpa [#allocation3], 1 }
 0x33a   :  { %1599 = vsyncpa [#allocation6], 1 }
 0x33b   :  { %1600 = vsyncpa [#allocation9], 1 }
 0x33c   :  { %1601 = vsyncpa [#allocation4], 1 }

</bundles_post_ra>
